<compile_context>
chip_gen: v5e
topology: v5e:2x2
jax: 0.10.0
libtpu: 0.0.40
codegen_flags: <defaults>
</compile_context>

<pallas_src>
import functools
import math

import jax
import jax.numpy as jnp
from jax.experimental import pallas as pl
from jax.experimental.pallas import tpu as pltpu


def _round_up(x, m):
    return ((x + m - 1) // m) * m


# --------------------------------------------------------------------------
# Kernel 1: fused Q/K/V projection (one big matmul + bias)
# --------------------------------------------------------------------------
def _qkv_proj_kernel(x_ref, w_ref, b_ref, o_ref):
    x = x_ref[...].astype(jnp.float32)          # (tm, H)
    w = w_ref[...].astype(jnp.float32)          # (H, 3H)  (constant block -> DMA'd once)
    b = b_ref[...].astype(jnp.float32)          # (1, 3H)
    y = jnp.dot(x, w, preferred_element_type=jnp.float32,
                precision=jax.lax.Precision.HIGHEST) + b
    o_ref[...] = y.astype(o_ref.dtype)


def _qkv_projection(x2, w_qkv, b_qkv, *, rows_tile=512):
    rows, hidden = x2.shape
    out_dim = w_qkv.shape[1]

    # dtype-aware sublane multiple: f32 -> 8, bf16 -> 16, int8/fp8 -> 32
    sub = 8 * (4 // jnp.dtype(x2.dtype).itemsize)
    tm = min(_round_up(rows_tile, sub), _round_up(rows, sub))
    rows_p = _round_up(rows, tm)
    if rows_p != rows:
        x2 = jnp.pad(x2, ((0, rows_p - rows), (0, 0)))

    out = pl.pallas_call(
        _qkv_proj_kernel,
        out_shape=jax.ShapeDtypeStruct((rows_p, out_dim), x2.dtype),
        grid_spec=pltpu.PrefetchScalarGridSpec(
            num_scalar_prefetch=0,
            grid=(rows_p // tm,),
            in_specs=[
                pl.BlockSpec((tm, hidden), lambda i: (i, 0)),
                pl.BlockSpec((hidden, out_dim), lambda i: (0, 0)),
                pl.BlockSpec((1, out_dim), lambda i: (0, 0)),
            ],
            out_specs=pl.BlockSpec((tm, out_dim), lambda i: (i, 0)),
        ),
        compiler_params=pltpu.CompilerParams(
            dimension_semantics=("parallel",),
            vmem_limit_bytes=64 * 1024 * 1024,
        ),
    )(x2, w_qkv, b_qkv)
    return out[:rows]


# --------------------------------------------------------------------------
# Kernel 2: scaled-dot-product attention, one (batch, head) per grid step
# --------------------------------------------------------------------------
def _attention_kernel(q_ref, k_ref, v_ref, mask_ref, o_ref, *, scale):
    q = q_ref[...].astype(jnp.float32)          # (S, d)
    k = k_ref[...].astype(jnp.float32)          # (S, d)
    v = v_ref[...].astype(jnp.float32)          # (S, d)

    # q @ k^T without materializing a transpose (contract on dim 1 of both)
    scores = jax.lax.dot_general(
        q, k, (((1,), (1,)), ((), ())),
        preferred_element_type=jnp.float32,
        precision=jax.lax.Precision.HIGHEST) * scale        # (S, S)
    scores = scores + mask_ref[...].astype(jnp.float32)      # (1, S) bcast over rows

    # numerically-stable softmax over keys
    m = jnp.max(scores, axis=-1, keepdims=True)
    e = jnp.exp(scores - m)
    probs = e / jnp.sum(e, axis=-1, keepdims=True)
    # TODO(synk): dropout(attention_probs) — identity in eval/inference mode.

    ctx = jnp.dot(probs, v, preferred_element_type=jnp.float32,
                  precision=jax.lax.Precision.HIGHEST)       # (S, d)
    o_ref[...] = ctx.astype(o_ref.dtype)


# --------------------------------------------------------------------------
# Module-level forward
# --------------------------------------------------------------------------
def bert_self_attention(hidden_states, attention_mask,
                        wq, bq, wk, bk, wv, bv,
                        *, num_heads, rows_tile=512):
    """hidden_states: (B, S, H); w*: (H, H) torch Linear weights (out, in);
    attention_mask: additive mask of shape (B, 1, 1, S) or (B, S)."""
    B, S, H = hidden_states.shape
    d = H // num_heads
    dtype = hidden_states.dtype

    # Fuse the three projections: y = x @ W^T + b  ->  x @ [Wq^T|Wk^T|Wv^T] + [bq|bk|bv]
    w_qkv = jnp.concatenate([wq.T, wk.T, wv.T], axis=1)       # (H, 3H)
    b_qkv = jnp.concatenate([bq, bk, bv]).reshape(1, 3 * H)

    x2 = hidden_states.reshape(B * S, H)
    qkv = _qkv_projection(x2, w_qkv, b_qkv, rows_tile=rows_tile)  # (B*S, 3H)
    qkv = qkv.reshape(B, S, 3, num_heads, d)
    q = jnp.transpose(qkv[:, :, 0], (0, 2, 1, 3))             # (B, nh, S, d)
    k = jnp.transpose(qkv[:, :, 1], (0, 2, 1, 3))
    v = jnp.transpose(qkv[:, :, 2], (0, 2, 1, 3))

    mask3 = attention_mask.reshape(B, 1, S).astype(jnp.float32)

    scale = 1.0 / math.sqrt(d)
    ctx = pl.pallas_call(
        functools.partial(_attention_kernel, scale=scale),
        out_shape=jax.ShapeDtypeStruct((B, num_heads, S, d), dtype),
        grid_spec=pltpu.PrefetchScalarGridSpec(
            num_scalar_prefetch=0,
            grid=(B, num_heads),
            in_specs=[
                pl.BlockSpec((None, None, S, d), lambda b, h: (b, h, 0, 0)),
                pl.BlockSpec((None, None, S, d), lambda b, h: (b, h, 0, 0)),
                pl.BlockSpec((None, None, S, d), lambda b, h: (b, h, 0, 0)),
                pl.BlockSpec((None, 1, S), lambda b, h: (b, 0, 0)),
            ],
            out_specs=pl.BlockSpec((None, None, S, d), lambda b, h: (b, h, 0, 0)),
        ),
        compiler_params=pltpu.CompilerParams(
            dimension_semantics=("parallel", "parallel"),
            vmem_limit_bytes=64 * 1024 * 1024,
        ),
    )(q, k, v, mask3)

    # (B, nh, S, d) -> (B, S, nh*d)  (== context_layer.permute(0,2,1,3).view(...))
    return jnp.transpose(ctx, (0, 2, 1, 3)).reshape(B, S, H)


# --------------------------------------------------------------------------
# Demo / correctness check
# --------------------------------------------------------------------------
if __name__ == "__main__":
    key = jax.random.PRNGKey(0)
    batch, seq, hidden, num_heads = 2, 8, 32, 4
    head = hidden // num_heads

    keys = jax.random.split(key, 8)
    x = jax.random.normal(keys[0], (batch, seq, hidden), dtype=jnp.float32)

    def lin_params(kw, kb):
        w = 0.1 * jax.random.normal(kw, (hidden, hidden), jnp.float32)  # (out, in)
        b = 0.1 * jax.random.normal(kb, (hidden,), jnp.float32)
        return w, b

    wq, bq = lin_params(keys[1], keys[2])
    wk, bk = lin_params(keys[3], keys[4])
    wv, bv = lin_params(keys[5], keys[6])

    # Canonical BERT extended attention mask: 0 for keep, -10000 for masked.
    keep = (jax.random.uniform(keys[7], (batch, seq)) > 0.25).astype(jnp.float32)
    attention_mask = (1.0 - keep)[:, None, None, :] * -10000.0          # (B,1,1,S)

    out = bert_self_attention(x, attention_mask, wq, bq, wk, bk, wv, bv,
                              num_heads=num_heads)
    out = jax.block_until_ready(out)

    # Pure-JAX reference matching the PyTorch forward (dropout = identity).
    def ref_fwd(x):
        hp = jax.lax.Precision.HIGHEST
        q = jnp.dot(x, wq.T, precision=hp) + bq
        k = jnp.dot(x, wk.T, precision=hp) + bk
        v = jnp.dot(x, wv.T, precision=hp) + bv

        def split(t):
            return jnp.transpose(t.reshape(batch, seq, num_heads, head), (0, 2, 1, 3))

        q, k, v = split(q), split(k), split(v)
        s = jnp.einsum("bhqd,bhkd->bhqk", q, k, precision=hp) / math.sqrt(head)
        s = s + attention_mask
        p = jax.nn.softmax(s, axis=-1)
        c = jnp.einsum("bhqk,bhkd->bhqd", p, v, precision=hp)
        return jnp.transpose(c, (0, 2, 1, 3)).reshape(batch, seq, hidden)

    ref = ref_fwd(x)
    assert out.shape == ref.shape and out.dtype == x.dtype
    err = float(jnp.max(jnp.abs(out - ref)))
    assert err < 1e-3, f"max abs err {err}"
    print("KERNEL_OK")
</pallas_src>

<mosaic_0001>
module attributes {stable_mosaic.version = 11 : i64} {
  func.func @_qkv_proj_kernel(%arg0: i32, %arg1: memref<16x32xf32, #tpu.memory_space<vmem>>, %arg2: memref<32x96xf32, #tpu.memory_space<vmem>>, %arg3: memref<1x96xf32, #tpu.memory_space<vmem>>, %arg4: memref<16x96xf32, #tpu.memory_space<vmem>>) attributes {dimension_semantics = [#tpu.dimension_semantics<parallel>], iteration_bounds = array<i64: 1>, scalar_prefetch = 0 : i64, scratch_operands = 0 : i64, tpu.core_type = #tpu.core_type<tc>, window_params = [{transform_indices = @transform_0, window_bounds = array<i64: 16, 32>}, {pipeline_mode = #tpu.pipeline_mode<synchronous>, transform_indices = @transform_1, window_bounds = array<i64: 32, 96>}, {pipeline_mode = #tpu.pipeline_mode<synchronous>, transform_indices = @transform_2, window_bounds = array<i64: 1, 96>}, {transform_indices = @transform_3, window_bounds = array<i64: 16, 96>}]} {
    %c0 = arith.constant 0 : index
    %c0_0 = arith.constant 0 : index
    %0 = vector.load %arg1[%c0, %c0_0] : memref<16x32xf32, #tpu.memory_space<vmem>>, vector<16x32xf32>
    %c0_1 = arith.constant 0 : index
    %c0_2 = arith.constant 0 : index
    %1 = vector.load %arg2[%c0_1, %c0_2] : memref<32x96xf32, #tpu.memory_space<vmem>>, vector<32x96xf32>
    %c0_3 = arith.constant 0 : index
    %c0_4 = arith.constant 0 : index
    %2 = vector.load %arg3[%c0_3, %c0_4] : memref<1x96xf32, #tpu.memory_space<vmem>>, vector<1x96xf32>
    %cst = arith.constant dense<0.000000e+00> : vector<16x96xf32>
    %3 = tpu.matmul %0, %1, %cst {dimension_numbers = #tpu.dot_dimension_numbers<[1], [0], [0], [1], [0, 0, 1, 1], [], []>, precision = #tpu.contract_precision<fp32>} : vector<16x32xf32>, vector<32x96xf32>, vector<16x96xf32> -> vector<16x96xf32>
    %4 = vector.broadcast %2 : vector<1x96xf32> to vector<16x96xf32>
    %5 = arith.addf %3, %4 : vector<16x96xf32>
    %c0_5 = arith.constant 0 : index
    %c0_6 = arith.constant 0 : index
    %6 = vector.load %arg4[%c0_5, %c0_6] : memref<16x96xf32, #tpu.memory_space<vmem>>, vector<16x96xf32>
    tpu.vector_store %arg4[%c0_5, %c0_6], %5 {strides = array<i32>} : memref<16x96xf32, #tpu.memory_space<vmem>>, vector<16x96xf32>,
    return
  }
  func.func @transform_0(%arg0: i32) -> (i32, i32) {
    %c0_i32 = arith.constant 0 : i32
    %c0_i32_0 = arith.constant 0 : i32
    return %arg0, %c0_i32 : i32, i32
  }
  func.func @transform_1(%arg0: i32) -> (i32, i32) {
    %c0_i32 = arith.constant 0 : i32
    %c0_i32_0 = arith.constant 0 : i32
    %c0_i32_1 = arith.constant 0 : i32
    return %c0_i32, %c0_i32_0 : i32, i32
  }
  func.func @transform_2(%arg0: i32) -> (i32, i32) {
    %c0_i32 = arith.constant 0 : i32
    %c0_i32_0 = arith.constant 0 : i32
    %c0_i32_1 = arith.constant 0 : i32
    return %c0_i32, %c0_i32_0 : i32, i32
  }
  func.func @transform_3(%arg0: i32) -> (i32, i32) {
    %c0_i32 = arith.constant 0 : i32
    %c0_i32_0 = arith.constant 0 : i32
    return %arg0, %c0_i32 : i32, i32
  }
}

</mosaic_0001>

<bundles_post_ra>
// kernel: tpu_custom_call.1
= control target key start
LH: loop header
LB: loop body
LE: loop exit
PB: predicated region body
PF: predicated region fallthrough
CT: control target
= control target key end

     0   :  { %8 = vsyncpa [#allocation3], 0  ;;  %s470_s0 = inlined_call_operand.hbm [shape: f32[16,32], index: 0, kind: input, shape index: {}]   ;;  %s471_s1 = inlined_call_operand.hbm [shape: f32[32,96], index: 1, kind: input, shape index: {}]   ;;  %s472_s2 = inlined_call_operand.vmem [shape: f32[1,96], index: 2, kind: input, shape index: {}]   ;;  %s473_s3 = inlined_call_operand.hbm [shape: f32[16,96], index: 3, kind: output, shape index: {}]  }
   0x1   :  { %9 = vsyncpa [#allocation6], 0 }
   0x2   :  { %10 = vsyncpa [#allocation4], 0  ;;  %s15_s14 = sshll.u32 %s470_s0, 4  ;;  %s395_s15 = smov [#allocation2]   ;;  %s16_s14 = int_to_ptr.hbm [resolvable:$true] %s15_s14 }
   0x3   :  { %s17_s16 = sshll.u32 %s395_s15, 4  ;;  %s28_s19 = sshll.u32 %s471_s1, 4  ;;  %s18_s16 = int_to_ptr.vmem [resolvable:$true] %s17_s16  ;;  %s29_s19 = int_to_ptr.hbm [resolvable:$true] %s28_s19 }
   0x4   :  { %s396_s20 = smov 128   ;;  %s397_s21 = smov 8  }
   0x5   :  { %23 = dma.hbm_to_vmem [thread:$0]  %s16_s14, 256, %s18_s16, [#allocation3], %s396_s20, %s396_s20, %s397_s21  }
   0x6   :  { %s398_s22 = smov [#allocation5]  }
   0x7   :  { %s30_s23 = sshll.u32 %s398_s22, 4  ;;  %s31_s23 = int_to_ptr.vmem [resolvable:$true] %s30_s23 }
   0x8   :  { %36 = dma.hbm_to_vmem [thread:$0]  %s29_s19, 512, %s31_s23, [#allocation6], %s396_s20, %s396_s20, %s397_s21  }
   0x9   :  { %389 = dma.done.wait [#allocation3], 256  }
   0xa   :  { %390 = vsyncadd [#allocation3], 4294967040 }
   0xb   :  { %391 = dma.done.wait [#allocation6], 512  }
   0xc   :  { %392 = vsyncadd [#allocation6], 4294966784  ;;  %vm57_vm0 = vcmask 261120   ;;  %v52_v0 = vld [vmem:[#allocation5 + $0x18] sm:$0xff]  ;;  %v51_v1 = vld [vmem:[#allocation5 + $0x10] sm:$0xff]  ;;  %vm280_vm1 = vcmask 785408  }
   0xd   :  { %v50_v2 = vld [vmem:[#allocation5 + $0x8] sm:$0xff]  ;;  %v76_v3 = vand.u32 4294901760, %v52_v0  ;;  %v432_v4 = vand.u32 4294901760, %v51_v1  ;;  %v49_v6 = vld [vmem:[#allocation5] sm:$0xff]  ;;  %v48_v7 = vld [vmem:[#allocation2 + $0x8] sm:$0xff]  ;;  %s289_s27 = sshll.u32 %s473_s3, 4  ;;  %s290_s27 = int_to_ptr.hbm [resolvable:$true] %s289_s27 }
   0xe   :  { %v434_v5 = vand.u32 4294901760, %v50_v2  ;;  %v47_v8 = vld [vmem:[#allocation2] sm:$0xff]  ;;  %v436_v9 = vand.u32 4294901760, %v49_v6  ;;  %v62_v10 = vsel %vm57_vm0, %v48_v7, 0 }
   0xf   :  { %v59_v11 = vsel %vm57_vm0, %v47_v8, 0  ;;  %303 = vmatpush.msra.mxu2 %v76_v3  ;;  %v114_v12 = vsub.f32 %v52_v0, %v76_v3  ;;  %v438_v13 = vand.u32 4294901760, %v62_v10  ;;  %v120_v14 = vsub.f32 %v51_v1, %v432_v4  ;;  %77 = vmatpush.msra.mxu0 %v76_v3  ;;  %v316_v39 = vld [vmem:[%s472_s2] ss:$0 sm:$0xff]  ;;  %s399_s2 = smov [#allocation7]  }
  0x10   :  { %v126_v15 = vsub.f32 %v50_v2, %v434_v5  ;;  %v132_v16 = vsub.f32 %v49_v6, %v436_v9  ;;  %v84_v17 = vand.u32 4294901760, %v59_v11  ;;  %s287_s24 = sshll.u32 %s399_s2, 4  ;;  %s288_s24 = int_to_ptr.vmem [resolvable:$true] %s287_s24 }
  0x11   :  { %304 = vmatpush.msra.mxu2 %v432_v4  ;;  %v115_v18 = vand.u32 4294901760, %v114_v12  ;;  %v93_v19 = vsub.f32 %v62_v10, %v438_v13  ;;  %v121_v20 = vand.u32 4294901760, %v120_v14  ;;  %79 = vmatpush.msra.mxu0 %v432_v4 }
  0x12   :  { %v127_v21 = vand.u32 4294901760, %v126_v15  ;;  %v133_v22 = vand.u32 4294901760, %v132_v16  ;;  %v85_v23 = vsub.f32 %v59_v11, %v84_v17 }
  0x13   :  { %305 = vmatpush.msra.mxu2 %v434_v5  ;;  %v116_v24 = vsub.f32 %v114_v12, %v115_v18  ;;  %v94_v25 = vand.u32 4294901760, %v93_v19  ;;  %v122_v26 = vsub.f32 %v120_v14, %v121_v20  ;;  %81 = vmatpush.msra.mxu0 %v434_v5 }
  0x14   :  { %v128_v27 = vsub.f32 %v126_v15, %v127_v21  ;;  %v86_v28 = vand.u32 4294901760, %v85_v23  ;;  %v134_v32 = vsub.f32 %v132_v16, %v133_v22 }
  0x15   :  { %306 = vmatpush.msra.mxu2 %v436_v9  ;;  %v117_v29 = vand.u32 4294901760, %v116_v24  ;;  %v95_v30 = vsub.f32 %v93_v19, %v94_v25  ;;  %v123_v31 = vand.u32 4294901760, %v122_v26  ;;  %83 = vmatpush.msra.mxu0 %v436_v9 }
  0x16   :  { %v87_v33 = vsub.f32 %v85_v23, %v86_v28  ;;  %v129_v35 = vand.u32 4294901760, %v128_v27  ;;  %v135_v37 = vand.u32 4294901760, %v134_v32 }
  0x17   :  { %160 = vmatpush.msrb.mxu2 %v114_v12  ;;  %229 = vmatpush.msrb.mxu0 %v115_v18  ;;  %v96_v34 = vand.u32 4294901760, %v95_v30 }
  0x18   :  { %307 = vmatpush.msra.mxu3 %v117_v29  ;;  %118 = vmatpush.msra.mxu1 %v117_v29  ;;  %v88_v36 = vand.u32 4294901760, %v87_v33 }
  0x19   :  { %163 = vmatpush.msrb.mxu2 %v120_v14  ;;  %233 = vmatpush.msrb.mxu0 %v121_v20 }
  0x1a   :  { %97 = vmatmul.f32.vlgmr.msra.gmra.mxu2 %v96_v34  ;;  %308 = vmatpush.msra.mxu3 %v123_v31 }
  0x1b   :  { %166 = vmatpush.msrb.mxu2 %v126_v15  ;;  %124 = vmatpush.msra.mxu1 %v123_v31 }
  0x1c   :  { %309 = vmatpush.msra.mxu3 %v129_v35  ;;  %89 = vmatmul.f32.vlgmr.msra.gmra.mxu0 %v88_v36 }
  0x1d   :  { %169 = vmatpush.msrb.mxu2 %v132_v16  ;;  %130 = vmatpush.msra.mxu1 %v129_v35 }
  0x1e   :  { %310 = vmatpush.msra.mxu3 %v135_v37  ;;  %237 = vmatpush.msrb.mxu0 %v127_v21 }
  0x1f   :  { %142 = vmatmul.f32.vlgmr.msra.gmra.mxu3 %v438_v13  ;;  %136 = vmatpush.msra.mxu1 %v135_v37 }
  0x20   :  { %194 = vmatpush.msrb.mxu3 %v76_v3  ;;  %138 = vmatmul.f32.vlgmr.msra.gmra.mxu1 %v84_v17 }
  0x21   :  { %264 = vmatpush.msrb.mxu1 %v76_v3  ;;  %241 = vmatpush.msrb.mxu0 %v133_v22 }
  0x22   :  { %172 = vmatmul.f32.vlgmr.msrb.gmra.mxu2 %v85_v23  ;;  %196 = vmatpush.msrb.mxu3 %v432_v4 }
  0x23   :  { %266 = vmatpush.msrb.mxu1 %v432_v4 }
  0x24   :  { %198 = vmatpush.msrb.mxu3 %v434_v5  ;;  %243 = vmatmul.f32.vlgmr.msrb.gmra.mxu0 %v84_v17 }
  0x25   :  { %268 = vmatpush.msrb.mxu1 %v434_v5 }
  0x26   :  { %200 = vmatpush.msrb.mxu3 %v436_v9 }
  0x27   :  { %204 = vmatmul.f32.vlgmr.msrb.gmra.mxu3 %v86_v28  ;;  %270 = vmatpush.msrb.mxu1 %v436_v9 }
  0x28   :  { %272 = vmatmul.f32.vlgmr.msrb.gmra.mxu1 %v84_v17 }
  0x2a   :  { %177 = vmatmul.f32.gmra.mxu2 %v93_v19 }
  0x2c   :  { %247 = vmatmul.f32.gmra.mxu0 %v438_v13 }
  0x2f   :  { %210 = vmatmul.f32.gmra.mxu3 %v94_v25 }
  0x30   :  { %276 = vmatmul.f32.gmra.mxu1 %v438_v13 }
  0x99   :  { %v90_v38 = vpop.f32.mrf.mxu0 }
  0x9a   :  { %v91_v41 = vadd.f32 %v316_v39, %v90_v38 }
  0x9d   :  { %v98_v40 = vpop.f32.mrf.mxu2  ;;  %v139_v42 = vpop.f32.mrf.mxu1 }
  0x9e   :  { %v140_v44 = vadd.f32 %v139_v42, %v91_v41  ;;  %v99_v50 = vadd.f32 %v316_v39, %v98_v40 }
  0xa1   :  { %v244_v47 = vpop.f32.mrf.mxu0 }
  0xa2   :  { %v143_v43 = vpop.f32.mrf.mxu3 }
  0xa3   :  { %v144_v54 = vadd.f32 %v143_v43, %v99_v50 }
  0xa5   :  { %v173_v45 = vpop.f32.mrf.mxu2  ;;  %v273_v49 = vpop.f32.mrf.mxu1 }
  0xa6   :  { %v174_v46 = vadd.f32 %v173_v45, %v140_v44 }
  0xa9   :  { %v248_v58 = vpop.f32.mrf.mxu0 }
  0xaa   :  { %v205_v48 = vpop.f32.mrf.mxu3 }
  0xab   :  { %v206_v51 = vadd.f32 %v205_v48, %v174_v46 }
  0xad   :  { %v245_v52 = vadd.f32 %v244_v47, %v206_v51  ;;  %v178_v53 = vpop.f32.mrf.mxu2  ;;  %v277_v60 = vpop.f32.mrf.mxu1 }
  0xae   :  { %v179_v56 = vadd.f32 %v178_v53, %v144_v54 }
  0xaf   :  { %v274_v55 = vadd.f32 %v273_v49, %v245_v52 }
  0xb1   :  { %281 = vst.msk [vmem:[#allocation7] sm:$0xff] %vm280_vm1, %v274_v55 }
  0xb2   :  { %v211_v57 = vpop.f32.mrf.mxu3 }
  0xb3   :  { %v212_v59 = vadd.f32 %v211_v57, %v179_v56 }
  0xb5   :  { %v249_v61 = vadd.f32 %v248_v58, %v212_v59 }
  0xb7   :  { %v278_v62 = vadd.f32 %v277_v60, %v249_v61 }
  0xb9   :  { %282 = vst.msk [vmem:[#allocation7 + $0x8] sm:$0xff] %vm280_vm1, %v278_v62 }
  0xba   :  { %295 = dma.vmem_to_hbm [thread:$0]  %s288_s24, 256, %s290_s27, [#allocation4], %s396_s20, %s396_s20, %s397_s21  }
  0xbb   :  { %393 = dma.done.wait [#allocation4], 256  }
  0xbc   :  { %394 = vsyncadd [#allocation4], 4294967040 }
  0xbd   :  { %300 = vsyncpa [#allocation3], 1 }
  0xbe   :  { %301 = vsyncpa [#allocation6], 1 }
  0xbf   :  { %302 = vsyncpa [#allocation4], 1 }

</bundles_post_ra>
